<compile_context>
chip_gen: v7x
topology: tpu7x:2x2x1
jax: 0.10.0
libtpu: 0.0.40
codegen_flags: <defaults>
</compile_context>

<pallas_src>
from functools import partial

import jax
import jax.numpy as jnp
import numpy as np
from jax.experimental import pallas as pl
from jax.experimental.pallas import tpu as pltpu


def _shuffle_attention_kernel(x_ref, p_ref, o_ref, *, inv_s, eps):
    # x_ref / o_ref: (TB, 2, Cg, S)   axis 1 = branch (0: channel, 1: spatial)
    # p_ref: (Cg, 4) columns = [cweight, cbias, sweight*gn_w, sweight*gn_b + sbias]
    cw = p_ref[:, 0:1]          # (Cg, 1)
    cb = p_ref[:, 1:2]
    sw = p_ref[:, 2:3]
    sb = p_ref[:, 3:4]

    # ---- channel-attention branch (stored before branch 2 -> minimal live temps)
    x0 = x_ref[:, 0].astype(jnp.float32)                       # (TB, Cg, S)
    m0 = jnp.sum(x0, axis=-1, keepdims=True) * inv_s           # (TB, Cg, 1)
    gate0 = jax.nn.sigmoid(cw * m0 + cb)                       # (TB, Cg, 1)
    o_ref[:, 0] = (x0 * gate0).astype(o_ref.dtype)

    # ---- spatial-attention branch: GroupNorm(groups == channels) == per-channel
    # instance norm; one-pass stats, normalization folded into the gate FMA.
    x1 = x_ref[:, 1].astype(jnp.float32)                       # (TB, Cg, S)
    m1 = jnp.sum(x1, axis=-1, keepdims=True) * inv_s           # mean
    ex2 = jnp.sum(x1 * x1, axis=-1, keepdims=True) * inv_s     # E[x^2]
    var = jnp.maximum(ex2 - m1 * m1, 0.0)                      # biased variance
    scale = sw * jax.lax.rsqrt(var + eps)                      # (TB, Cg, 1)
    shift = sb - scale * m1                                    # (TB, Cg, 1)
    gate1 = jax.nn.sigmoid(scale * x1 + shift)                 # (TB, Cg, S)
    o_ref[:, 1] = (x1 * gate1).astype(o_ref.dtype)


def shuffle_attention(x, cweight, cbias, sweight, sbias, gn_weight, gn_bias, *, G=8, eps=1e-5):
    """x: (B, C, H, W); all parameter vectors have shape (C // (2*G),)."""
    B, C, H, W = x.shape
    assert C % (2 * G) == 0, "channel must be divisible by 2*G"
    assert G % 2 == 0, "folded channel_shuffle requires an even number of groups"
    Cg = C // (2 * G)
    Gh = G // 2
    S = H * W
    S_pad = ((S + 127) // 128) * 128                  # lane-dense stores

    xr = x.reshape(B, C, S)
    if S_pad != S:
        xr = jnp.pad(xr, ((0, 0), (0, 0), (0, S_pad - S)))
    # channel c = g*2Cg + branch*Cg + cg  ->  (B, G, 2, Cg, S_pad), a free view.
    xr = xr.reshape(B, G, 2, Cg, S_pad)

    f32 = jnp.float32
    cw = cweight.reshape(Cg).astype(f32)
    cb = cbias.reshape(Cg).astype(f32)
    # Fold the GroupNorm affine into the spatial scale/shift:
    #   sweight*(gn_w*xhat + gn_b) + sbias == (sweight*gn_w)*xhat + (sweight*gn_b + sbias)
    sw = (sweight.reshape(Cg) * gn_weight.reshape(Cg)).astype(f32)
    sb = (sweight.reshape(Cg) * gn_bias.reshape(Cg) + sbias.reshape(Cg)).astype(f32)
    params = jnp.stack([cw, cb, sw, sb], axis=-1)     # (Cg, 4), grid-invariant

    # Coarsen along batch: target ~2 MiB of input per grid step (within v7x's
    # smaller 64 MiB VMEM once double-buffered in/out + f32 temps are counted).
    slab_bytes = 2 * Cg * S_pad * x.dtype.itemsize
    TB = max(1, min(B, (2 * 1024 * 1024) // max(slab_bytes, 1)))
    while B % TB:
        TB -= 1

    # Grid: (shuffle-half h, batch-block, group-within-half).  Leading parallel
    # axis has extent 2 so v7x can split work across its two TensorCores.
    grid = (2, B // TB, Gh)

    in_spec = pl.BlockSpec(
        (TB, None, 2, Cg, S_pad),
        lambda h, bi, gp: (bi, h * Gh + gp, 0, 0, 0))
    p_spec = pl.BlockSpec((Cg, 4), lambda h, bi, gp: (0, 0))
    # Output (B, Gh, 2, Cg, 2*S_pad): flattening (gp, branch, cg) gives the
    # shuffled channel index's j part and the half h selects the S_pad slab of
    # the last axis, so out.reshape(B, C//2, 2, S)->(B, C, H, W) is free.
    out_spec = pl.BlockSpec(
        (TB, None, 2, Cg, S_pad),
        lambda h, bi, gp: (bi, gp, 0, 0, h))

    out = pl.pallas_call(
        partial(_shuffle_attention_kernel, inv_s=1.0 / float(S), eps=float(eps)),
        out_shape=jax.ShapeDtypeStruct((B, Gh, 2, Cg, 2 * S_pad), x.dtype),
        grid=grid,
        in_specs=[in_spec, p_spec],
        out_specs=out_spec,
        compiler_params=pltpu.CompilerParams(
            dimension_semantics=("parallel", "parallel", "parallel"),
            vmem_limit_bytes=32 * 1024 * 1024,
        ),
    )(xr, params)

    out = out.reshape(B, C // 2, 2, S_pad)            # free view
    if S_pad != S:
        out = out[..., :S]                            # drop lane padding
    return out.reshape(B, C, H, W)                    # free view (merges (j,h)->c)


def shuffle_attention_reference(x, cweight, cbias, sweight, sbias, gn_weight, gn_bias, *, G=8, eps=1e-5):
    """Pure-JAX reference mirroring the PyTorch forward (no folding / fast paths)."""
    B, C, H, W = x.shape
    Cg = C // (2 * G)
    xr = x.reshape(B * G, 2 * Cg, H, W)
    x0 = xr[:, :Cg]
    x1 = xr[:, Cg:]

    # channel attention
    xc = jnp.mean(x0, axis=(2, 3), keepdims=True)
    xc = cweight.reshape(1, Cg, 1, 1) * xc + cbias.reshape(1, Cg, 1, 1)
    xc = x0 * jax.nn.sigmoid(xc)

    # spatial attention: GroupNorm(num_groups == num_channels) then affine gate
    m = jnp.mean(x1, axis=(2, 3), keepdims=True)
    v = jnp.mean((x1 - m) ** 2, axis=(2, 3), keepdims=True)
    xh = (x1 - m) / jnp.sqrt(v + eps)
    xh = xh * gn_weight.reshape(1, Cg, 1, 1) + gn_bias.reshape(1, Cg, 1, 1)
    xs = sweight.reshape(1, Cg, 1, 1) * xh + sbias.reshape(1, Cg, 1, 1)
    xs = x1 * jax.nn.sigmoid(xs)

    out = jnp.concatenate([xc, xs], axis=1).reshape(B, C, H, W)
    out = out.reshape(B, 2, C // 2, H, W).transpose(0, 2, 1, 3, 4).reshape(B, C, H, W)
    return out


if __name__ == "__main__":
    key = jax.random.PRNGKey(0)
    kx1, kx2, k1, k2, k3, k4, k5, k6 = jax.random.split(key, 8)

    # channel=64, G=4 -> Cg = 8 (sublane-dense).
    G = 4
    C = 64
    Cg = C // (2 * G)

    # Non-trivial parameters (module defaults are zeros/ones) to exercise both gates.
    cweight = 0.5 * jax.random.normal(k1, (Cg,), dtype=jnp.float32)
    cbias = 1.0 + 0.5 * jax.random.normal(k2, (Cg,), dtype=jnp.float32)
    sweight = 0.5 * jax.random.normal(k3, (Cg,), dtype=jnp.float32)
    sbias = 1.0 + 0.5 * jax.random.normal(k4, (Cg,), dtype=jnp.float32)
    gn_w = 1.0 + 0.1 * jax.random.normal(k5, (Cg,), dtype=jnp.float32)
    gn_b = 0.1 * jax.random.normal(k6, (Cg,), dtype=jnp.float32)

    # Case 1: lane-aligned spatial extent (16x16 -> S = 256).
    x1 = jax.random.normal(kx1, (2, C, 16, 16), dtype=jnp.float32)
    out1 = jax.block_until_ready(
        shuffle_attention(x1, cweight, cbias, sweight, sbias, gn_w, gn_b, G=G))
    ref1 = shuffle_attention_reference(x1, cweight, cbias, sweight, sbias, gn_w, gn_b, G=G)
    np.testing.assert_allclose(np.asarray(out1), np.asarray(ref1), rtol=1e-4, atol=1e-5)

    # Case 2: non-multiple-of-128 spatial extent (14x14 -> S = 196) exercises
    # the lane-padding path (pad to 256, slice back).
    x2 = jax.random.normal(kx2, (2, C, 14, 14), dtype=jnp.float32)
    out2 = jax.block_until_ready(
        shuffle_attention(x2, cweight, cbias, sweight, sbias, gn_w, gn_b, G=G))
    ref2 = shuffle_attention_reference(x2, cweight, cbias, sweight, sbias, gn_w, gn_b, G=G)
    np.testing.assert_allclose(np.asarray(out2), np.asarray(ref2), rtol=1e-4, atol=1e-5)

    print("KERNEL_OK")
</pallas_src>

<mosaic_0001>
module attributes {stable_mosaic.version = 11 : i64} {
  func.func @_shuffle_attention_kernel(%arg0: i32, %arg1: i32, %arg2: i32, %arg3: memref<2x1x2x8x256xf32, #tpu.memory_space<vmem>>, %arg4: memref<8x4xf32, #tpu.memory_space<vmem>>, %arg5: memref<2x1x2x8x256xf32, #tpu.memory_space<vmem>>) attributes {dimension_semantics = [#tpu.dimension_semantics<parallel>, #tpu.dimension_semantics<parallel>, #tpu.dimension_semantics<parallel>], iteration_bounds = array<i64: 2, 1, 2>, scalar_prefetch = 0 : i64, scratch_operands = 0 : i64, tpu.core_type = #tpu.core_type<tc>, window_params = [{transform_indices = @transform_0, window_bounds = array<i64: 2, 1, 2, 8, 256>}, {pipeline_mode = #tpu.pipeline_mode<synchronous>, transform_indices = @transform_1, window_bounds = array<i64: 8, 4>}, {transform_indices = @transform_2, window_bounds = array<i64: 2, 1, 2, 8, 256>}]} {
    %c0 = arith.constant 0 : index
    %c0_0 = arith.constant 0 : index
    %0 = vector.load %arg4[%c0, %c0_0] : memref<8x4xf32, #tpu.memory_space<vmem>>, vector<8x1xf32>
    %c0_1 = arith.constant 0 : index
    %c1 = arith.constant 1 : index
    %1 = vector.load %arg4[%c0_1, %c1] : memref<8x4xf32, #tpu.memory_space<vmem>>, vector<8x1xf32>
    %c0_2 = arith.constant 0 : index
    %c2 = arith.constant 2 : index
    %2 = vector.load %arg4[%c0_2, %c2] : memref<8x4xf32, #tpu.memory_space<vmem>>, vector<8x1xf32>
    %c0_3 = arith.constant 0 : index
    %c3 = arith.constant 3 : index
    %3 = vector.load %arg4[%c0_3, %c3] : memref<8x4xf32, #tpu.memory_space<vmem>>, vector<8x1xf32>
    %c0_4 = arith.constant 0 : index
    %c0_5 = arith.constant 0 : index
    %c0_6 = arith.constant 0 : index
    %c0_7 = arith.constant 0 : index
    %c0_8 = arith.constant 0 : index
    %4 = vector.load %arg3[%c0_4, %c0_5, %c0_6, %c0_7, %c0_8] : memref<2x1x2x8x256xf32, #tpu.memory_space<vmem>>, vector<2x1x1x8x256xf32>
    %5 = vector.shape_cast %4 : vector<2x1x1x8x256xf32> to vector<2x8x256xf32>
    %cst = arith.constant dense<0.000000e+00> : vector<2x8xf32>
    %6 = vector.multi_reduction <add>, %5, %cst [2] : vector<2x8x256xf32> to vector<2x8xf32>
    %7 = vector.shape_cast %6 : vector<2x8xf32> to vector<2x8x1xf32>
    %cst_9 = arith.constant 3.906250e-03 : f32
    %8 = vector.broadcast %cst_9 : f32 to vector<2x8x1xf32>
    %9 = arith.mulf %7, %8 : vector<2x8x1xf32>
    %10 = vector.shape_cast %0 : vector<8x1xf32> to vector<1x8x1xf32>
    %11 = vector.broadcast %10 : vector<1x8x1xf32> to vector<2x8x1xf32>
    %12 = arith.mulf %11, %9 : vector<2x8x1xf32>
    %13 = vector.shape_cast %1 : vector<8x1xf32> to vector<1x8x1xf32>
    %14 = vector.broadcast %13 : vector<1x8x1xf32> to vector<2x8x1xf32>
    %15 = arith.addf %12, %14 : vector<2x8x1xf32>
    %16 = arith.negf %15 : vector<2x8x1xf32>
    %17 = math.exp %16 : vector<2x8x1xf32>
    %cst_10 = arith.constant 1.000000e+00 : f32
    %18 = vector.broadcast %cst_10 : f32 to vector<2x8x1xf32>
    %19 = arith.addf %18, %17 : vector<2x8x1xf32>
    %20 = arith.divf %18, %19 : vector<2x8x1xf32>
    %21 = vector.broadcast %20 : vector<2x8x1xf32> to vector<2x8x256xf32>
    %22 = arith.mulf %5, %21 : vector<2x8x256xf32>
    %c0_11 = arith.constant 0 : index
    %c0_12 = arith.constant 0 : index
    %c0_13 = arith.constant 0 : index
    %c0_14 = arith.constant 0 : index
    %c0_15 = arith.constant 0 : index
    %23 = vector.load %arg5[%c0_11, %c0_12, %c0_13, %c0_14, %c0_15] : memref<2x1x2x8x256xf32, #tpu.memory_space<vmem>>, vector<2x1x1x8x256xf32>
    %24 = vector.shape_cast %23 : vector<2x1x1x8x256xf32> to vector<2x8x256xf32>
    %25 = vector.shape_cast %22 : vector<2x8x256xf32> to vector<2x1x1x8x256xf32>
    tpu.vector_store %arg5[%c0_11, %c0_12, %c0_13, %c0_14, %c0_15], %25 {strides = array<i32>} : memref<2x1x2x8x256xf32, #tpu.memory_space<vmem>>, vector<2x1x1x8x256xf32>,
    %c0_16 = arith.constant 0 : index
    %c0_17 = arith.constant 0 : index
    %c1_18 = arith.constant 1 : index
    %c0_19 = arith.constant 0 : index
    %c0_20 = arith.constant 0 : index
    %26 = vector.load %arg3[%c0_16, %c0_17, %c1_18, %c0_19, %c0_20] : memref<2x1x2x8x256xf32, #tpu.memory_space<vmem>>, vector<2x1x1x8x256xf32>
    %27 = vector.shape_cast %26 : vector<2x1x1x8x256xf32> to vector<2x8x256xf32>
    %cst_21 = arith.constant dense<0.000000e+00> : vector<2x8xf32>
    %28 = vector.multi_reduction <add>, %27, %cst_21 [2] : vector<2x8x256xf32> to vector<2x8xf32>
    %29 = vector.shape_cast %28 : vector<2x8xf32> to vector<2x8x1xf32>
    %cst_22 = arith.constant 3.906250e-03 : f32
    %30 = vector.broadcast %cst_22 : f32 to vector<2x8x1xf32>
    %31 = arith.mulf %29, %30 : vector<2x8x1xf32>
    %32 = arith.mulf %27, %27 : vector<2x8x256xf32>
    %cst_23 = arith.constant dense<0.000000e+00> : vector<2x8xf32>
    %33 = vector.multi_reduction <add>, %32, %cst_23 [2] : vector<2x8x256xf32> to vector<2x8xf32>
    %34 = vector.shape_cast %33 : vector<2x8xf32> to vector<2x8x1xf32>
    %cst_24 = arith.constant 3.906250e-03 : f32
    %35 = vector.broadcast %cst_24 : f32 to vector<2x8x1xf32>
    %36 = arith.mulf %34, %35 : vector<2x8x1xf32>
    %37 = arith.mulf %31, %31 : vector<2x8x1xf32>
    %38 = arith.subf %36, %37 : vector<2x8x1xf32>
    %cst_25 = arith.constant 0.000000e+00 : f32
    %39 = vector.broadcast %cst_25 : f32 to vector<2x8x1xf32>
    %40 = arith.maximumf %38, %39 : vector<2x8x1xf32>
    %cst_26 = arith.constant 9.99999974E-6 : f32
    %41 = vector.broadcast %cst_26 : f32 to vector<2x8x1xf32>
    %42 = arith.addf %40, %41 : vector<2x8x1xf32>
    %43 = math.rsqrt %42 : vector<2x8x1xf32>
    %44 = vector.shape_cast %2 : vector<8x1xf32> to vector<1x8x1xf32>
    %45 = vector.broadcast %44 : vector<1x8x1xf32> to vector<2x8x1xf32>
    %46 = arith.mulf %45, %43 : vector<2x8x1xf32>
    %47 = arith.mulf %46, %31 : vector<2x8x1xf32>
    %48 = vector.shape_cast %3 : vector<8x1xf32> to vector<1x8x1xf32>
    %49 = vector.broadcast %48 : vector<1x8x1xf32> to vector<2x8x1xf32>
    %50 = arith.subf %49, %47 : vector<2x8x1xf32>
    %51 = vector.broadcast %46 : vector<2x8x1xf32> to vector<2x8x256xf32>
    %52 = arith.mulf %51, %27 : vector<2x8x256xf32>
    %53 = vector.broadcast %50 : vector<2x8x1xf32> to vector<2x8x256xf32>
    %54 = arith.addf %52, %53 : vector<2x8x256xf32>
    %55 = arith.negf %54 : vector<2x8x256xf32>
    %56 = math.exp %55 : vector<2x8x256xf32>
    %cst_27 = arith.constant 1.000000e+00 : f32
    %57 = vector.broadcast %cst_27 : f32 to vector<2x8x256xf32>
    %58 = arith.addf %57, %56 : vector<2x8x256xf32>
    %59 = arith.divf %57, %58 : vector<2x8x256xf32>
    %60 = arith.mulf %27, %59 : vector<2x8x256xf32>
    %c0_28 = arith.constant 0 : index
    %c0_29 = arith.constant 0 : index
    %c1_30 = arith.constant 1 : index
    %c0_31 = arith.constant 0 : index
    %c0_32 = arith.constant 0 : index
    %61 = vector.load %arg5[%c0_28, %c0_29, %c1_30, %c0_31, %c0_32] : memref<2x1x2x8x256xf32, #tpu.memory_space<vmem>>, vector<2x1x1x8x256xf32>
    %62 = vector.shape_cast %61 : vector<2x1x1x8x256xf32> to vector<2x8x256xf32>
    %63 = vector.shape_cast %60 : vector<2x8x256xf32> to vector<2x1x1x8x256xf32>
    tpu.vector_store %arg5[%c0_28, %c0_29, %c1_30, %c0_31, %c0_32], %63 {strides = array<i32>} : memref<2x1x2x8x256xf32, #tpu.memory_space<vmem>>, vector<2x1x1x8x256xf32>,
    return
  }
  func.func @transform_0(%arg0: i32, %arg1: i32, %arg2: i32) -> (i32, i32, i32, i32, i32) {
    %c2_i32 = arith.constant 2 : i32
    %0 = arith.muli %arg0, %c2_i32 : i32
    %1 = arith.addi %0, %arg2 : i32
    %c0_i32 = arith.constant 0 : i32
    %c0_i32_0 = arith.constant 0 : i32
    %c0_i32_1 = arith.constant 0 : i32
    %c0_i32_2 = arith.constant 0 : i32
    return %arg1, %1, %c0_i32, %c0_i32_0, %c0_i32_1 : i32, i32, i32, i32, i32
  }
  func.func @transform_1(%arg0: i32, %arg1: i32, %arg2: i32) -> (i32, i32) {
    %c0_i32 = arith.constant 0 : i32
    %c0_i32_0 = arith.constant 0 : i32
    %c0_i32_1 = arith.constant 0 : i32
    return %c0_i32, %c0_i32_0 : i32, i32
  }
  func.func @transform_2(%arg0: i32, %arg1: i32, %arg2: i32) -> (i32, i32, i32, i32, i32) {
    %c0_i32 = arith.constant 0 : i32
    %c0_i32_0 = arith.constant 0 : i32
    %c0_i32_1 = arith.constant 0 : i32
    return %arg1, %arg2, %c0_i32, %c0_i32_0, %arg0 : i32, i32, i32, i32, i32
  }
}

</mosaic_0001>

<bundles_post_ra>
// kernel: tpu_custom_call.1
= control target key start
LH: loop header
LB: loop body
LE: loop exit
PB: predicated region body
PF: predicated region fallthrough
CT: control target
= control target key end

     0   :  { %7 = vsyncpa [#allocation3], 0  ;;  %s1107_s0 = inlined_call_operand.hbm [shape: f32[2,4,2,8,256], index: 0, kind: input, shape index: {}]   ;;  %s1108_s1 = inlined_call_operand.vmem [shape: f32[8,4], index: 1, kind: input, shape index: {}]   ;;  %s1109_s2 = inlined_call_operand.hbm [shape: f32[2,2,2,8,512], index: 2, kind: output, shape index: {}]  }
   0x1   :  { %9 = vsyncpa [#allocation3 + $0x1], 0 }
   0x2   :  { %10 = vsyncpa [#allocation4], 0 }
   0x3   :  { %12 = vsyncpa [#allocation4 + $0x1], 0  ;;  %s859_s9 = smov 0   ;;  %s861_s10 = smov 0  }
   0x4   :  { %s863_s11 = smov 0   ;;  %s865_s12 = smov 0  }
   0x5   :  { %s867_s13 = smov 0   ;;  %s869_s14 = smov 0  }
   0x6   :  { %s871_s15 = smov 0   ;;  %s873_s16 = smov 0  }
   0x7   :  { %s875_s17 = smov 0   ;;  %s877_s18 = smov 0  }
   0x8   :  { %s879_s19 = smov 0  }
   0x9 LB: > { %1114 = sst [smem:[#allocation13_spill]] %s816_s17  ;;  %s532_s20 = sadd.s32 4294967295, %s824_s19   ;;  %s824_s19 = sphi %s879_s19, %s18_s19   ;;  %s820_s18 = sphi %s877_s18, %s1126_s18   ;;  %s816_s17 = sphi %s875_s17, %s1125_s17   ;;  %s812_s16 = sphi %s873_s16, %s1124_s16   ;;  %s808_s15 = sphi %s871_s15, %s1123_s15   ;;  %s804_s14 = sphi %s869_s14, %s1132_s14   ;;  %s800_s13 = sphi %s867_s13, %s1131_s13   ;;  %s796_s12 = sphi %s865_s12, %s1130_s12   ;;  %s792_s11 = sphi %s863_s11, %s1129_s11   ;;  %s788_s10 = sphi %s861_s10, %s1128_s10   ;;  %s784_s9 = sphi %s859_s9, %s1127_s9  }
   0xa   : > { %1115 = sst [smem:[#allocation14_spill]] %s820_s18  ;;  %s533_s21 = sadd.s32 4294967294, %s824_s19  }
   0xb   : > { %s30_s22 = sadd.s32 1, %s816_s17  ;;  %s37_s23 = sadd.s32 1, %s820_s18 }
   0xc   : > { %p31_p0 = scmp.ge.s32.totalorder %s30_s22, 2  ;;  %s534_s24 = sshll.u32 %s820_s18, 1 }
   0xd   : > { %s918_s25 = sadd.s32 %s816_s17, %s534_s24  ;;  %s50_s26 = sadd.s32 1, %s804_s14 }
   0xe   : > { %s1134_s22 = smov (%p31_p0, %s30_s22), 0  ;;  %s1136_s23 = smov (!%p31_p0, %s37_s23), %s820_s18 }
   0xf   : > { %1116 = sst [smem:[#allocation15_spill]] %s1134_s22  ;;  %p57_p1 = scmp.ne.s32.totalorder %s804_s14, %s800_s13 }
  0x10   : > { %p58_p2 = scmp.eq.s32.totalorder %s824_s19, 0  ;;  %p39_p3 = scmp.ge.s32.totalorder %s1136_s23, 2 }
  0x11   : > { %p63_p4 = scmp.ne.s32.totalorder %s800_s13, %s796_s12  ;;  %p64_p6 = scmp.eq.s32.totalorder %s532_s20, 0 }
  0x12   : > { %p928_p5 = por %p58_p2, %p57_p1  ;;  %s1138_s23 = smov (%p39_p3, %s1136_s23), 0 }
  0x13   : > { %1118 = sst [smem:[#allocation16_spill]] %s1138_s23  ;;  %p936_p7 = por %p64_p6, %p63_p4 }
  0x14   : > { %s95_s29 = ssub.s32 %s816_s17, %s1134_s22  ;;  %s535_s30 = sshll.u32 %s1138_s23, 1 }
  0x15   : > { %s97_s3 = ssub.s32 %s820_s18, %s1138_s23  ;;  %s44_s4 = sadd.s32 %s535_s30, %s1134_s22 }
  0x16   : > { %s98_s5 = sor.u32 %s97_s3, %s95_s29  ;;  %s46_s6 = ssub.s32 %s918_s25, %s44_s4 }
  0x17   : > { %p99_p8 = scmp.eq.s32.totalorder %s98_s5, 0  ;;  %p48_p9 = scmp.eq.s32.totalorder %s46_s6, 0 }
  0x18   : > { %s101_s7 = sadd.s32 1, %s792_s11  ;;  %p111_p10 = scmp.ne.s32.totalorder %s792_s11, %s788_s10 }
  0x19   : > { %s949_s8 = scalar_select %p99_p8, %s792_s11, %s101_s7  }
  0x1a   : > { %s952_s12 = scalar_select %p48_p9, %s804_s14, %s50_s26  }
  0x1b   : > { %p112_p11 = scmp.eq.s32.totalorder %s532_s20, 3  ;;  %p117_p12 = scmp.ne.s32.totalorder %s788_s10, %s784_s9 }
  0x1c   : > { %p118_p13 = scmp.eq.s32.totalorder %s533_s21, 3  ;;  %p537_p2 = scmp.ge.s32.totalorder %s824_s19, 4 }
  0x1d   : > { %p962_p0 = por %p112_p11, %p111_p10 }
  0x1e   : > { %p966_p1 = por %p118_p13, %p117_p12  ;;  %137 = sbr.rel (%p537_p2) target bundleno = 50 (0x32), region = 20 }
  0x25   : > { %s141_s20 = sand.u32 1, %s804_s14   ;;  %s567_s21 = sshll.u32 %s918_s25, 9 }
  0x26   : > { %s538_s26 = sshll.u32 %s141_s20, 6  ;;  %s156_s4 = scalar_lea.hbm %s1107_s0, %s567_s21 }
  0x27   : > { %s568_s5 = scalar_select %p928_p5, [#allocation0], [#allocation10] }
  0x28   : > { %s145_s6 = scalar_lea.vmem [#allocation2], %s538_s26  ;;  %s826_s22 = smov 2048  }
  0x29   : > { %s169_s7 = sshll.u32 %s145_s6, 4  ;;  %s161_s23 = sld [smem:[%s568_s5]]   ;;  %s170_s7 = int_to_ptr.vmem [resolvable:$true] %s169_s7 }
  0x2a   : > { %569 = sst [smem:[#allocation7]] (%p928_p5), %s826_s22  ;;  %s827_s18 = smov 512  }
  0x2b   : > { %570 = sst [smem:[#allocation7 + $0x1]] (%p928_p5), %s827_s18  ;;  %s828_s25 = smov 2  }
  0x2c   : > { %571 = sst [smem:[#allocation7 + $0x2]] (%p928_p5), %s828_s25  ;;  %s829_s17 = smov 256  }
  0x2d   : > { %572 = sst [smem:[#allocation7 + $0x3]] (%p928_p5), %s829_s17  ;;  %s830_s26 = smov 16  }
  0x2e   : > { %573 = sst [smem:[#allocation7 + $0x4]] (%p928_p5), %s829_s17  ;;  %s142_s3 = scalar_lea.sflag [#allocation3], %s141_s20 }
  0x2f   : > { %s542_s21 = sshll.u32 %s161_s23, 26  ;;  %574 = sst [smem:[#allocation7 + $0x5]] (%p928_p5), %s830_s26 }
  0x30   : > { %s543_s30 = sadd.s32 134217728, %s542_s21  ;;  %s831_s5 = smov [#allocation6]  }
  0x31   : > { %575 = dma.general (%p928_p5), %s156_s4, 1024, %s170_s7, %s142_s3, %s831_s5, [#allocation7], %s543_s30, 0  }
  0x32 PF: > { %p544_p3 = scmp.ge.s32.totalorder %s824_s19, 1  ;;  %p190_p4 = scmp.lt.s32.totalorder %s824_s19, 5 }
  0x34   : > { %p191_p6 = pnand %p544_p3, %p190_p4 }
  0x35   : > { %s196_s18 = sand.u32 (!%p191_p6), 1, %s800_s13  }
  0x36   : > { %194 = sbr.rel (%p191_p6) target bundleno = 526 (0x20e), region = 28  ;;  %s545_s17 = sshll.u32 (!%p191_p6), %s196_s18, 6 }
  0x37   : > { %s197_s22 = scalar_lea.sflag (!%p191_p6), [#allocation3], %s196_s18  ;;  %s200_s23 = scalar_lea.vmem (!%p191_p6), [#allocation2], %s545_s17 }
  0x3d   : > { %775 = dma.done.wait (%p936_p7), %s197_s22, 1024  }
  0x3e   : > { %777 = vsyncadd (%p936_p7), %s197_s22, 4294966272  ;;  %v999_v0 = vld [vmem:[%s200_s23 + $0x10] sm:$0xff]  ;;  %v1001_v1 = vld [vmem:[%s200_s23 + $0x18] sm:$0xff]  ;;  %v832_v18 = vmov 2   ;;  %s833_s20 = smov 1   ;;  %s834_s4 = smov 127  }
  0x3f   : > { %v1003_v2 = vld [vmem:[%s200_s23 + $0x30] sm:$0xff]  ;;  %v282_v3 = vadd.f32 %v1001_v1, %v999_v0  ;;  %v290_v4 = vmul.f32 %v999_v0, %v999_v0  ;;  %v291_v5 = vmul.f32 %v1001_v1, %v1001_v1  ;;  %v1011_v6 = vld [vmem:[%s200_s23 + $0x38] sm:$0xff]  ;;  %v1019_v11 = vld [vmem:[%s200_s23] sm:$0xff]  ;;  %697 = vset.pattern.permute.xlu0 %v832_v18  ;;  %696 = vset.pattern.permute.xlu1 %v832_v18  ;;  %v835_v42 = vmov 0   ;;  %s218_s6 = sand.u32 1, %s788_s10  }
  0x40   : > { %v292_v7 = vmul.f32 %v1003_v2, %v1003_v2  ;;  %v293_v8 = vmul.f32 %v1011_v6, %v1011_v6  ;;  %v285_v10 = vadd.f32 %v1011_v6, %v1003_v2  ;;  %v1021_v12 = vld [vmem:[%s200_s23 + $0x8] sm:$0xff]  ;;  %v1023_v14 = vld [vmem:[%s200_s23 + $0x20] sm:$0xff]  ;;  %v836_v43 = vmov 3   ;;  %s546_s7 = sshll.u32 %s218_s6, 6  ;;  %s388_s21 = scalar_lea.sflag [#allocation4], %s218_s6 }
  0x41   : > { %283 = vadd.xlane.f32.xlu0 %v282_v3  ;;  %v294_v9 = vadd.f32 %v291_v5, %v290_v4  ;;  %v1025_v15 = vld [vmem:[%s200_s23 + $0x28] sm:$0xff]  ;;  %v231_v16 = vadd.f32 %v1021_v12, %v1019_v11  ;;  %v226_v35 = vld [vmem:[%s1108_s1] sm:$0xff]  ;;  %s220_s25 = scalar_lea.vmem [#allocation5], %s546_s7 }
  0x42   : > { %v297_v13 = vadd.f32 %v293_v8, %v292_v7  ;;  %v234_v17 = vadd.f32 %v1025_v15, %v1023_v14 }
  0x43   : > { %295 = vadd.xlane.f32.xlu1 %v294_v9 }
  0x45   : > { %286 = vadd.xlane.f32.xlu0 %v285_v10 }
  0x47   : > { %298 = vadd.xlane.f32.xlu1 %v297_v13 }
  0x49   : > { %232 = vadd.xlane.f32.xlu0 %v231_v16 }
  0x4b   : > { %235 = vadd.xlane.f32.xlu1 %v234_v17 }
  0xce   : > { %v284_v19 = vpop.xlane.xlu0 %283 }
  0xcf   : > { %v288_v20 = vmul.f32 0.00390625, %v284_v19 }
  0xd0   : > { %v296_v21 = vpop.xlane.xlu1 %295 }
  0xd1   : > { %v302_v22 = vmul.f32 %v288_v20, %v288_v20  ;;  %v300_v23 = vmul.f32 0.00390625, %v296_v21 }
  0xd2   : > { %v287_v24 = vpop.xlane.xlu0 %286 }
  0xd3   : > { %v304_v25 = vsub.f32 %v300_v23, %v302_v22  ;;  %v289_v26 = vmul.f32 0.00390625, %v287_v24 }
  0xd4   : > { %v299_v27 = vpop.xlane.xlu1 %298 }
  0xd5   : > { %v306_v28 = vmax.f32 %v304_v25, 0.0  ;;  %v303_v29 = vmul.f32 %v289_v26, %v289_v26  ;;  %v301_v30 = vmul.f32 0.00390625, %v299_v27 }
  0xd6   : > { %v233_v44 = vpop.xlane.xlu0 %232 }
  0xd7   : > { %v308_v31 = vadd.f32 1e-05, %v306_v28  ;;  %v305_v32 = vsub.f32 %v301_v30, %v303_v29  ;;  %v237_v48 = vmul.f32 0.00390625, %v233_v44 }
  0xd8   : > { %v236_v45 = vpop.xlane.xlu1 %235 }
  0xd9   : > { %702 = vrsqrt.f32 %v308_v31  ;;  %v307_v33 = vmax.f32 %v305_v32, 0.0  ;;  %v238_v49 = vmul.f32 0.00390625, %v236_v45  ;;  %v239_v52 = vmul.f32 %v237_v48, %v226_v35 }
  0xdb   : > { %v309_v34 = vadd.f32 1e-05, %v307_v33  ;;  %v240_v53 = vmul.f32 %v238_v49, %v226_v35 }
  0xdd   : > { %704 = vrsqrt.f32 %v309_v34 }
  0xe3   : > { %v703_v36 = vpop.eup %702 }
  0xe4   : > { %v312_v37 = vmul.f32 %v703_v36, %v226_v35 }
  0xe6   : > { %v314_v38 = vmul.f32 %v312_v37, %v288_v20 }
  0xe7   : > { %v705_v39 = vpop.eup %704 }
  0xe8   : > { %318 = vrot.lane.b32.xlu0 %v314_v38, %s833_s20  ;;  %v313_v40 = vmul.f32 %v705_v39, %v226_v35 }
  0xea   : > { %v315_v41 = vmul.f32 %v313_v40, %v289_v26 }
  0xec   : > { %320 = vrot.lane.b32.xlu1 %v315_v41, %s833_s20  ;;  %333 = vperm.xlu0 %697, %v313_v40  }
  0xf0   : > { %242 = vrot.lane.b32.xlu1 %v226_v35, %s834_s4  ;;  %699 = vset.pattern.permute.xlu0 %v835_v42 }
  0xf4   : > { %328 = vperm.xlu1 %696, %v312_v37  }
  0xf8   : > { %698 = vset.pattern.permute.xlu1 %v836_v43 }
 0x15a   : > { %v319_v46 = vpop.permute.xlu0 %318 }
 0x15b   : > { %v324_v47 = vsub.f32 %v226_v35, %v319_v46 }
 0x15d   : > { %342 = vperm.xlu1 %698, %v324_v47  }
 0x15e   : > { %v321_v50 = vpop.permute.xlu1 %320 }
 0x15f   : > { %v325_v51 = vsub.f32 %v226_v35, %v321_v50 }
 0x161   : > { %347 = vperm.xlu1 %698, %v325_v51  }
 0x162   : > { %v243_v54 = vpop.permute.xlu1 %242 }
 0x163   : > { %v245_v55 = vadd.f32 %v243_v54, %v239_v52  ;;  %v246_v56 = vadd.f32 %v243_v54, %v240_v53 }
 0x165   : > { %v547_v57 = vmul.f32 -1.442695, %v245_v55  ;;  %v548_v58 = vmul.f32 -1.442695, %v246_v56  ;;  %700 = vset.pattern.permute.xlu1 %v835_v42 }
 0x167   : > { %706 = vpow2.f32 %v547_v57 }
 0x168   : > { %708 = vpow2.f32 %v548_v58 }
 0x16b   : > { %v334_v8 = vpop.permute.xlu0 %333 }
 0x16c   : > { %v338_v16 = vmul.f32 %v1003_v2, %v334_v8  ;;  %v339_v17 = vmul.f32 %v1011_v6, %v334_v8 }
 0x171   : > { %v707_v59 = vpop.eup %706 }
 0x172   : > { %v709_v60 = vpop.eup %708  ;;  %v253_v61 = vadd.f32 1.0, %v707_v59 }
 0x173   : > { %v254_v62 = vadd.f32 1.0, %v709_v60  ;;  %v329_v4 = vpop.permute.xlu1 %328 }
 0x174   : > { %710 = vrcp.f32 %v253_v61  ;;  %v336_v5 = vmul.f32 %v999_v0, %v329_v4  ;;  %v337_v7 = vmul.f32 %v1001_v1, %v329_v4 }
 0x175   : > { %712 = vrcp.f32 %v254_v62 }
 0x17e   : > { %v711_v63 = vpop.eup %710 }
 0x17f   : > { %v713_v3 = vpop.eup %712  ;;  %261 = vperm.xlu0 %699, %v711_v63  }
 0x180   : > { %266 = vperm.xlu1 %700, %v713_v3  }
 0x183   : > { %701 = vset.pattern.permute.xlu0 %v836_v43 }
 0x1dc   : > { %v343_v9 = vpop.permute.xlu1 %342 }
 0x1dd   : > { %v350_v10 = vadd.f32 %v343_v9, %v336_v5  ;;  %v351_v13 = vadd.f32 %v343_v9, %v337_v7 }
 0x1df   : > { %v553_v18 = vmul.f32 -1.442695, %v350_v10  ;;  %v554_v19 = vmul.f32 -1.442695, %v351_v13 }
 0x1e0   : > { %v348_v20 = vpop.permute.xlu1 %347 }
 0x1e1   : > { %714 = vpow2.f32 %v553_v18  ;;  %v352_v21 = vadd.f32 %v348_v20, %v338_v16  ;;  %v353_v22 = vadd.f32 %v348_v20, %v339_v17 }
 0x1e2   : > { %716 = vpow2.f32 %v554_v19 }
 0x1e3   : > { %v555_v23 = vmul.f32 -1.442695, %v352_v21  ;;  %v556_v24 = vmul.f32 -1.442695, %v353_v22 }
 0x1e5   : > { %718 = vpow2.f32 %v555_v23 }
 0x1e6   : > { %720 = vpow2.f32 %v556_v24 }
 0x1eb   : > { %v715_v25 = vpop.eup %714 }
 0x1ec   : > { %v717_v26 = vpop.eup %716  ;;  %v366_v27 = vadd.f32 1.0, %v715_v25 }
 0x1ed   : > { %v367_v28 = vadd.f32 1.0, %v717_v26 }
 0x1ee   : > { %722 = vrcp.f32 %v366_v27 }
 0x1ef   : > { %v719_v29 = vpop.eup %718  ;;  %724 = vrcp.f32 %v367_v28 }
 0x1f0   : > { %v721_v30 = vpop.eup %720  ;;  %v368_v31 = vadd.f32 1.0, %v719_v29 }
 0x1f1   : > { %v369_v32 = vadd.f32 1.0, %v721_v30 }
 0x1f2   : > { %726 = vrcp.f32 %v368_v31 }
 0x1f3   : > { %728 = vrcp.f32 %v369_v32 }
 0x1f8   : > { %v723_v33 = vpop.eup %722 }
 0x1f9   : > { %v725_v34 = vpop.eup %724  ;;  %v378_v35 = vmul.f32 %v723_v33, %v999_v0 }
 0x1fa   : > { %v379_v36 = vmul.f32 %v725_v34, %v1001_v1 }
 0x1fb   : > { %557 = vst [vmem:[%s220_s25 + $0x10] sm:$0xff] %v378_v35 }
 0x1fc   : > { %v727_v37 = vpop.eup %726  ;;  %558 = vst [vmem:[%s220_s25 + $0x18] sm:$0xff] %v379_v36 }
 0x1fd   : > { %v729_v38 = vpop.eup %728  ;;  %v380_v39 = vmul.f32 %v727_v37, %v1003_v2 }
 0x1fe   : > { %v381_v40 = vmul.f32 %v729_v38, %v1011_v6  ;;  %v262_v41 = vpop.permute.xlu0 %261 }
 0x1ff   : > { %559 = vst [vmem:[%s220_s25 + $0x30] sm:$0xff] %v380_v39  ;;  %v267_v42 = vpop.permute.xlu1 %266  ;;  %v269_v43 = vmul.f32 %v262_v41, %v1019_v11  ;;  %v270_v44 = vmul.f32 %v262_v41, %v1021_v12 }
 0x200   : > { %560 = vst [vmem:[%s220_s25 + $0x38] sm:$0xff] %v381_v40  ;;  %v271_v0 = vmul.f32 %v267_v42, %v1023_v14  ;;  %v272_v1 = vmul.f32 %v267_v42, %v1025_v15 }
 0x201   : > { %273 = vst [vmem:[%s220_s25] sm:$0xff] %v269_v43  ;;  %274 = vst [vmem:[%s220_s25 + $0x8] sm:$0xff] %v270_v44 }
 0x202   : > { %275 = vst [vmem:[%s220_s25 + $0x20] sm:$0xff] %v271_v0  ;;  %276 = vst [vmem:[%s220_s25 + $0x28] sm:$0xff] %v272_v1 }
 0x203   : > { %s562_s26 = sshll.u32 %s812_s16, 1  ;;  %s563_s30 = sshll.u32 %s808_s15, 3 }
 0x204   : > { %s401_s3 = sadd.s32 %s563_s30, %s562_s26  ;;  %s422_s5 = sshll.u32 %s220_s25, 4  ;;  %s423_s5 = int_to_ptr.vmem [resolvable:$true] %s422_s5 }
 0x205   : > { %s564_s18 = sshll.u32 %s401_s3, 7  ;;  %s837_s27 = smov 512  }
 0x206   : > { %s405_s23 = scalar_lea.hbm %s1109_s2, %s564_s18  ;;  %577 = sst [smem:[#allocation9]] (%p962_p0), %s837_s27 }
 0x207   : > { %s838_s28 = smov 2048   ;;  %s839_s20 = smov 2  }
 0x208   : > { %578 = sst [smem:[#allocation9 + $0x1]] (%p962_p0), %s838_s28  ;;  %s840_s15 = smov 256  }
 0x209   : > { %579 = sst [smem:[#allocation9 + $0x2]] (%p962_p0), %s839_s20  ;;  %s841_s16 = smov 16  }
 0x20a   : > { %580 = sst [smem:[#allocation9 + $0x3]] (%p962_p0), %s840_s15  ;;  %s842_s4 = smov [#allocation8]  }
 0x20b   : > { %581 = sst [smem:[#allocation9 + $0x4]] (%p962_p0), %s837_s27  ;;  %s843_s6 = smov 0  }
 0x20c   : > { %582 = sst [smem:[#allocation9 + $0x5]] (%p962_p0), %s841_s16 }
 0x20d   : > { %583 = dma.general (%p962_p0), %s423_s5, 1024, %s405_s23, %s388_s21, %s842_s4, [#allocation9], %s843_s6, 0  }
 0x20e PF: > { %p589_p5 = scmp.ge.s32.totalorder %s824_s19, 2  ;;  %s450_s7 = sand.u32 1, %s784_s9  }
 0x20f   : > { %s451_s25 = scalar_lea.sflag [#allocation4], %s450_s7 }
 0x210   : > { %p586_p7 = pnand %p589_p5, %p966_p1 }
 0x212   : > { %779 = dma.done.wait (!%p586_p7), %s451_s25, 1024  }
 0x213   : > { %781 = vsyncadd (!%p586_p7), %s451_s25, 4294966272  ;;  %s18_s19 = sadd.s32 1, %s824_s19   ;;  %s1122_s24 = smov %s952_s12 }
 0x214   : > { %p15_p8 = scmp.ge.s32.totalorder %s18_s19, 6   ;;  %s1123_s15 = sld [smem:[#allocation13_spill]] }
 0x215   : > { %s1124_s16 = sld [smem:[#allocation14_spill]]  ;;  %s1125_s17 = sld [smem:[#allocation15_spill]] }
 0x216   : > { %s1126_s18 = sld [smem:[#allocation16_spill]]  ;;  %s1127_s9 = smov %s788_s10 }
 0x217   : > { %s1128_s10 = smov %s792_s11  ;;  %s1129_s11 = smov %s949_s8 }
 0x218   : > { %s1130_s12 = smov %s800_s13  ;;  %s1131_s13 = smov %s804_s14 }
 0x219   : > { %s1132_s14 = smov %s1122_s24  ;;  %17 = sbr.rel (!%p15_p8) target bundleno = 9 (0x9), region = 85 }
 0x220   :  { %456 = vsyncpa [#allocation3], 1 }
 0x221   :  { %458 = vsyncpa [#allocation3 + $0x1], 1 }
 0x222   :  { %459 = vsyncpa [#allocation4], 1 }
 0x223   :  { %461 = vsyncpa [#allocation4 + $0x1], 1 }

</bundles_post_ra>
